<compile_context>
chip_gen: v7x
topology: tpu7x:2x2x1
jax: 0.10.0
libtpu: 0.0.40
codegen_flags: <defaults>
</compile_context>

<pallas_src>
import functools

import jax
import jax.numpy as jnp
from jax.experimental import pallas as pl
from jax.experimental.pallas import tpu as pltpu

_LANES = 128


def _bce_blur_kernel(pred_ref, true_ref, out_ref, *,
                     inv_alpha, n_valid, block_rows, need_mask):
    x = pred_ref[...].astype(jnp.float32)
    y = true_ref[...].astype(jnp.float32)

    def tile_loss(xv, yv):
        # t = exp(-|x|) feeds both the stable BCE log term and the sigmoid.
        t = jnp.exp(-jnp.abs(xv))
        # Numerically-stable BCEWithLogitsLoss (reduction='none'):
        #   loss = max(x, 0) - x*y + log(1 + exp(-|x|))
        loss = jnp.maximum(xv, 0.0) - xv * yv + jnp.log1p(t)
        # sigmoid(x): x >= 0 -> 1/(1+t), x < 0 -> t/(1+t)   (reuses t)
        r = 1.0 / (1.0 + t)
        p = jnp.where(xv >= 0.0, r, t * r)
        # Blur factor: 1 - exp((sigmoid(x) - y - 1) / (alpha + 1e-4))
        return loss * (1.0 - jnp.exp((p - yv - 1.0) * inv_alpha))

    if not need_mask:
        # No padded / out-of-bounds elements anywhere: plain per-lane partials.
        out_ref[...] = jnp.sum(tile_loss(x, y), axis=0, keepdims=True)
    else:
        i = pl.program_id(0)
        is_last = i == pl.num_programs(0) - 1

        @pl.when(jnp.logical_not(is_last))
        def _():
            out_ref[...] = jnp.sum(tile_loss(x, y), axis=0, keepdims=True)

        @pl.when(is_last)
        def _():
            # Only the final block can contain padded / out-of-bounds tail
            # elements; zero their loss contribution before the partial sum.
            row_idx = jax.lax.broadcasted_iota(jnp.int32, x.shape, 0)
            col_idx = jax.lax.broadcasted_iota(jnp.int32, x.shape, 1)
            flat_idx = (i * block_rows + row_idx) * _LANES + col_idx
            loss = jnp.where(flat_idx < n_valid, tile_loss(x, y), 0.0)
            out_ref[...] = jnp.sum(loss, axis=0, keepdims=True)


def bce_blur_with_logits_loss(pred, true, alpha=0.05, *, block_rows=2048):
    """Mean BCE-with-logits loss with yolov5 'blur' weighting (scalar)."""
    assert pred.shape == true.shape
    n_valid = int(pred.size)
    inv_alpha = 1.0 / (float(alpha) + 1e-4)

    # Flatten without upcasting (DMA the narrow dtype, cast in-kernel).
    pred_flat = pred.reshape(-1)
    true_flat = true.reshape(-1)

    # Lane padding only when size is NOT a multiple of 128; the common case is
    # a zero-copy reshape (no extra HBM pass).
    n_lane_pad = int(pl.cdiv(n_valid, _LANES)) * _LANES
    if n_lane_pad != n_valid:
        pred_flat = jnp.pad(pred_flat, (0, n_lane_pad - n_valid))
        true_flat = jnp.pad(true_flat, (0, n_lane_pad - n_valid))
    n_rows = n_lane_pad // _LANES
    pred2d = pred_flat.reshape(n_rows, _LANES)
    true2d = true_flat.reshape(n_rows, _LANES)

    # Tile choice: big row blocks (default ~1 MiB f32 per input per buffer);
    # (8,128)-aligned unless the whole array fits in a single block (in which
    # case block == full array dims, which is always legal).
    if n_rows <= block_rows or n_rows < 8:
        br = n_rows
    else:
        br = max(8, (block_rows // 8) * 8)
    num_blocks = int(pl.cdiv(n_rows, br))

    # Masking is needed only if the last block covers elements past n_valid
    # (lane padding or a ragged final row block).
    need_mask = (num_blocks * br * _LANES) != n_valid

    kernel = functools.partial(
        _bce_blur_kernel, inv_alpha=inv_alpha, n_valid=n_valid,
        block_rows=br, need_mask=need_mask)

    partials = pl.pallas_call(
        kernel,
        out_shape=jax.ShapeDtypeStruct((num_blocks, _LANES), jnp.float32),
        grid_spec=pltpu.PrefetchScalarGridSpec(
            num_scalar_prefetch=0,
            grid=(num_blocks,),
            in_specs=[
                pl.BlockSpec((br, _LANES), lambda i: (i, 0)),
                pl.BlockSpec((br, _LANES), lambda i: (i, 0)),
            ],
            out_specs=pl.BlockSpec((1, _LANES), lambda i: (i, 0)),
        ),
        compiler_params=pltpu.CompilerParams(
            dimension_semantics=("parallel",)),
    )(pred2d, true2d)

    # Tiny final reduction + mean outside the kernel.
    return jnp.sum(partials) / jnp.float32(n_valid)


def _reference(pred, true, alpha=0.05):
    x = pred.astype(jnp.float32)
    y = true.astype(jnp.float32)
    loss = jnp.maximum(x, 0.0) - x * y + jnp.log1p(jnp.exp(-jnp.abs(x)))
    p = jax.nn.sigmoid(x)
    alpha_factor = 1.0 - jnp.exp((p - y - 1.0) / (alpha + 1e-4))
    return jnp.mean(loss * alpha_factor)


if __name__ == "__main__":
    key = jax.random.PRNGKey(0)
    k1, k2, k3, k4, k5, k6 = jax.random.split(key, 6)

    # Primary NCHW example (size % 128 == 0 -> zero-copy path, single block).
    pred = jax.random.normal(k1, (2, 4, 16, 16), dtype=jnp.float32)
    true = jax.random.uniform(k2, (2, 4, 16, 16), dtype=jnp.float32)
    out = jax.block_until_ready(bce_blur_with_logits_loss(pred, true, alpha=0.05))
    ref = _reference(pred, true, alpha=0.05)
    assert jnp.allclose(out, ref, atol=1e-5, rtol=1e-5), (out, ref)

    # Ragged size (not a multiple of 128): exercises lane pad + masked tail.
    pred_r = jax.random.normal(k3, (3, 5, 7, 9), dtype=jnp.float32)
    true_r = jax.random.uniform(k4, (3, 5, 7, 9), dtype=jnp.float32)
    out_r = jax.block_until_ready(
        bce_blur_with_logits_loss(pred_r, true_r, alpha=0.05))
    ref_r = _reference(pred_r, true_r, alpha=0.05)
    assert jnp.allclose(out_r, ref_r, atol=1e-5, rtol=1e-5), (out_r, ref_r)

    # Multi-block "parallel" grid with a partial last block (per-lane partials
    # + last-block-only masking path).
    pred_m = jax.random.normal(k5, (5, 8, 8, 16), dtype=jnp.float32)
    true_m = jax.random.uniform(k6, (5, 8, 8, 16), dtype=jnp.float32)
    out_m = jax.block_until_ready(
        bce_blur_with_logits_loss(pred_m, true_m, alpha=0.05, block_rows=16))
    ref_m = _reference(pred_m, true_m, alpha=0.05)
    assert jnp.allclose(out_m, ref_m, atol=1e-5, rtol=1e-5), (out_m, ref_m)

    print("KERNEL_OK")
</pallas_src>

<mosaic_0001>
module attributes {stable_mosaic.version = 11 : i64} {
  func.func @_bce_blur_kernel(%arg0: i32, %arg1: memref<16x128xf32, #tpu.memory_space<vmem>>, %arg2: memref<16x128xf32, #tpu.memory_space<vmem>>, %arg3: memref<1x128xf32, #tpu.memory_space<vmem>>) attributes {dimension_semantics = [#tpu.dimension_semantics<parallel>], iteration_bounds = array<i64: 1>, scalar_prefetch = 0 : i64, scratch_operands = 0 : i64, tpu.core_type = #tpu.core_type<tc>, window_params = [{transform_indices = @transform_0, window_bounds = array<i64: 16, 128>}, {transform_indices = @transform_1, window_bounds = array<i64: 16, 128>}, {transform_indices = @transform_2, window_bounds = array<i64: 1, 128>}]} {
    %c0 = arith.constant 0 : index
    %c0_0 = arith.constant 0 : index
    %0 = vector.load %arg1[%c0, %c0_0] : memref<16x128xf32, #tpu.memory_space<vmem>>, vector<16x128xf32>
    %c0_1 = arith.constant 0 : index
    %c0_2 = arith.constant 0 : index
    %1 = vector.load %arg2[%c0_1, %c0_2] : memref<16x128xf32, #tpu.memory_space<vmem>>, vector<16x128xf32>
    %2 = math.absf %0 : vector<16x128xf32>
    %cst = arith.constant 0.000000e+00 : f32
    %3 = vector.broadcast %cst : f32 to vector<16x128xf32>
    %4 = arith.subf %3, %2 : vector<16x128xf32>
    %5 = math.exp %4 : vector<16x128xf32>
    %cst_3 = arith.constant 0.000000e+00 : f32
    %6 = vector.broadcast %cst_3 : f32 to vector<16x128xf32>
    %7 = arith.maximumf %0, %6 : vector<16x128xf32>
    %8 = arith.mulf %0, %1 : vector<16x128xf32>
    %9 = arith.subf %7, %8 : vector<16x128xf32>
    %10 = math.log1p %5 : vector<16x128xf32>
    %11 = arith.addf %9, %10 : vector<16x128xf32>
    %cst_4 = arith.constant 1.000000e+00 : f32
    %12 = vector.broadcast %cst_4 : f32 to vector<16x128xf32>
    %13 = arith.addf %12, %5 : vector<16x128xf32>
    %cst_5 = arith.constant 1.000000e+00 : f32
    %14 = vector.broadcast %cst_5 : f32 to vector<16x128xf32>
    %15 = arith.divf %14, %13 : vector<16x128xf32>
    %cst_6 = arith.constant 0.000000e+00 : f32
    %16 = vector.broadcast %cst_6 : f32 to vector<16x128xf32>
    %17 = arith.cmpf oge, %0, %16 : vector<16x128xf32>
    %18 = arith.mulf %5, %15 : vector<16x128xf32>
    %19 = arith.select %17, %15, %18 : vector<16x128xi1>, vector<16x128xf32>
    %20 = arith.subf %19, %1 : vector<16x128xf32>
    %cst_7 = arith.constant 1.000000e+00 : f32
    %21 = vector.broadcast %cst_7 : f32 to vector<16x128xf32>
    %22 = arith.subf %20, %21 : vector<16x128xf32>
    %cst_8 = arith.constant 19.9600792 : f32
    %23 = vector.broadcast %cst_8 : f32 to vector<16x128xf32>
    %24 = arith.mulf %22, %23 : vector<16x128xf32>
    %25 = math.exp %24 : vector<16x128xf32>
    %cst_9 = arith.constant 1.000000e+00 : f32
    %26 = vector.broadcast %cst_9 : f32 to vector<16x128xf32>
    %27 = arith.subf %26, %25 : vector<16x128xf32>
    %28 = arith.mulf %11, %27 : vector<16x128xf32>
    %cst_10 = arith.constant dense<0.000000e+00> : vector<128xf32>
    %29 = vector.multi_reduction <add>, %28, %cst_10 [0] : vector<16x128xf32> to vector<128xf32>
    %30 = vector.shape_cast %29 : vector<128xf32> to vector<1x128xf32>
    %c0_11 = arith.constant 0 : index
    %c0_12 = arith.constant 0 : index
    %31 = vector.load %arg3[%c0_11, %c0_12] : memref<1x128xf32, #tpu.memory_space<vmem>>, vector<1x128xf32>
    tpu.vector_store %arg3[%c0_11, %c0_12], %30 {strides = array<i32>} : memref<1x128xf32, #tpu.memory_space<vmem>>, vector<1x128xf32>,
    return
  }
  func.func @transform_0(%arg0: i32) -> (i32, i32) {
    %c0_i32 = arith.constant 0 : i32
    %c0_i32_0 = arith.constant 0 : i32
    return %arg0, %c0_i32 : i32, i32
  }
  func.func @transform_1(%arg0: i32) -> (i32, i32) {
    %c0_i32 = arith.constant 0 : i32
    %c0_i32_0 = arith.constant 0 : i32
    return %arg0, %c0_i32 : i32, i32
  }
  func.func @transform_2(%arg0: i32) -> (i32, i32) {
    %c0_i32 = arith.constant 0 : i32
    %c0_i32_0 = arith.constant 0 : i32
    return %arg0, %c0_i32 : i32, i32
  }
}

</mosaic_0001>

<bundles_post_ra>
// kernel: tpu_custom_call.1
= control target key start
LH: loop header
LB: loop body
LE: loop exit
PB: predicated region body
PF: predicated region fallthrough
CT: control target
= control target key end

     0   :  { %7 = vsyncpa [#allocation3], 0  ;;  %s279_s0 = inlined_call_operand.hbm [shape: f32[16,128], index: 0, kind: input, shape index: {}]   ;;  %s280_s1 = inlined_call_operand.hbm [shape: f32[16,128], index: 1, kind: input, shape index: {}]   ;;  %s281_s2 = inlined_call_operand.hbm [shape: f32[1,128], index: 2, kind: output, shape index: {}]  }
   0x1   :  { %8 = vsyncpa [#allocation6], 0 }
   0x2   :  { %9 = vsyncpa [#allocation4], 0  ;;  %s223_s9 = smov [#allocation2]   ;;  %s151_s13 = scalar_lea.hbm %s279_s0, 256 }
   0x3   :  { %s15_s10 = sshll.u32 %s223_s9, 4  ;;  %p152_p0 = scmp.ne.s32.totalorder %s279_s0, %s151_s13  ;;  %s16_s10 = int_to_ptr.vmem [resolvable:$true] %s15_s10 }
   0x4   :  { %p155_p1 = scmp.lt.u32.totalorder %s151_s13, %s279_s0 }
   0x6   :  { %p157_p2 = pnand %p155_p1, %p152_p0 }
   0x8   :  { %160 = shalt.err (!%p157_p2)
}
   0x9   :  { %s161_s18 = scalar_lea.vmem %s16_s10, 256  ;;  %p166_p4 = scmp.lt.s32.totalorder %s16_s10, %s16_s10 }
   0xa   :  { %p162_p3 = scmp.ne.s32.totalorder %s16_s10, %s161_s18  ;;  %p167_p5 = scmp.lt.s32.totalorder %s161_s18, %s161_s18 }
   0xc   :  { %p168_p6 = por %p167_p5, %p166_p4 }
   0xe   :  { %p169_p7 = pnand %p168_p6, %p162_p3 }
  0x10   :  { %172 = shalt.err (!%p169_p7)
}
  0x11   :  { %s224_s19 = smov 128   ;;  %s225_s20 = smov 8  }
  0x12   :  { %21 = dma.hbm_to_vmem [thread:$0]  %s279_s0, 256, %s16_s10, [#allocation3], %s224_s19, %s224_s19, %s225_s20  }
  0x13   :  { %s226_s23 = smov [#allocation5]   ;;  %s173_s27 = scalar_lea.hbm %s280_s1, 256 }
  0x14   :  { %s27_s24 = sshll.u32 %s226_s23, 4  ;;  %p174_p8 = scmp.ne.s32.totalorder %s280_s1, %s173_s27  ;;  %s28_s24 = int_to_ptr.vmem [resolvable:$true] %s27_s24 }
  0x15   :  { %p177_p9 = scmp.lt.u32.totalorder %s173_s27, %s280_s1 }
  0x17   :  { %p179_p10 = pnand %p177_p9, %p174_p8 }
  0x19   :  { %182 = shalt.err (!%p179_p10)
}
  0x1a   :  { %s183_s4 = scalar_lea.vmem %s28_s24, 256  ;;  %p188_p12 = scmp.lt.s32.totalorder %s28_s24, %s28_s24 }
  0x1b   :  { %p184_p11 = scmp.ne.s32.totalorder %s28_s24, %s183_s4  ;;  %p189_p13 = scmp.lt.s32.totalorder %s183_s4, %s183_s4 }
  0x1d   :  { %p190_p0 = por %p189_p13, %p188_p12 }
  0x1f   :  { %p191_p1 = pnand %p190_p0, %p184_p11 }
  0x21   :  { %194 = shalt.err (!%p191_p1)
}
  0x22   :  { %33 = dma.hbm_to_vmem [thread:$0]  %s280_s1, 256, %s28_s24, [#allocation6], %s224_s19, %s224_s19, %s225_s20  }
  0x23   :  { %217 = dma.done.wait [#allocation3], 256  }
  0x24   :  { %218 = vsyncadd [#allocation3], 4294967040 }
  0x25   :  { %219 = dma.done.wait [#allocation6], 256  }
  0x26   :  { %220 = vsyncadd [#allocation6], 4294967040  ;;  %v40_v0 = vld [vmem:[#allocation2] sm:$0xff]  ;;  %v41_v1 = vld [vmem:[#allocation2 + $0x8] sm:$0xff]  ;;  %s227_s1 = smov [#allocation7]  }
  0x27   :  { %v44_v2 = vand.u32 2147483647, %v40_v0  ;;  %v45_v3 = vand.u32 2147483647, %v41_v1  ;;  %vm84_vm0 = vcmp.ge.f32.partialorder %v40_v0, 0.0  ;;  %v42_v14 = vld [vmem:[#allocation5] sm:$0xff] }
  0x28   :  { %vm85_vm1 = vcmp.ge.f32.partialorder %v41_v1, 0.0  ;;  %v43_v16 = vld [vmem:[#allocation5 + $0x8] sm:$0xff]  ;;  %v52_v36 = vmax.f32 %v40_v0, 0.0  ;;  %v54_v37 = vmul.f32 %v42_v14, %v40_v0  ;;  %v53_v38 = vmax.f32 %v41_v1, 0.0  ;;  %s118_s6 = sshll.u32 %s227_s1, 4  ;;  %s119_s6 = int_to_ptr.vmem [resolvable:$true] %s118_s6 }
  0x29   :  { %v46_v4 = vsub.f32 0.0, %v44_v2  ;;  %v47_v5 = vsub.f32 0.0, %v45_v3  ;;  %v55_v39 = vmul.f32 %v43_v16, %v41_v1  ;;  %s195_s7 = scalar_lea.vmem %s119_s6, 16  ;;  %s199_s8 = scalar_lea.vmem %s119_s6, 32 }
  0x2a   :  { %v56_v44 = vsub.f32 %v52_v36, %v54_v37  ;;  %p196_p2 = scmp.ne.s32.totalorder %s119_s6, %s195_s7  ;;  %p200_p3 = scmp.lt.s32.totalorder %s119_s6, %s119_s6 }
  0x2b   :  { %v48_v6 = vmul.f32 1.442695, %v46_v4  ;;  %v50_v7 = vmul.f32 1.442695, %v47_v5  ;;  %v57_v45 = vsub.f32 %v53_v38, %v55_v39  ;;  %p201_p4 = scmp.lt.s32.totalorder %s199_s8, %s195_s7 }
  0x2d   :  { %135 = vpow2.f32 %v48_v6  ;;  %p202_p5 = por %p201_p4, %p200_p3 }
  0x2e   :  { %137 = vpow2.f32 %v50_v7 }
  0x2f   :  { %p203_p6 = pnand %p202_p5, %p196_p2 }
  0x37   :  { %v136_v8 = vpop.eup %135 }
  0x38   :  { %v138_v9 = vpop.eup %137  ;;  %v58_v10 = vadd.f32 1.0, %v136_v8  ;;  %v61_v22 = vmul.f32 -0.5, %v136_v8  ;;  %v64_v31 = vand.u32 2147483647, %v136_v8 }
  0x39   :  { %v67_v11 = vadd.f32 1.0, %v138_v9  ;;  %v70_v24 = vmul.f32 -0.5, %v138_v9  ;;  %v73_v35 = vand.u32 2147483647, %v138_v9 }
  0x3a   :  { %139 = vrcp.f32 %v58_v10  ;;  %v62_v28 = vadd.f32 1.0, %v61_v22  ;;  %vm65_vm2 = vcmp.lt.f32.partialorder %v64_v31, 0.0004427343 }
  0x3b   :  { %141 = vrcp.f32 %v67_v11  ;;  %v71_v32 = vadd.f32 1.0, %v70_v24  ;;  %vm74_vm3 = vcmp.lt.f32.partialorder %v73_v35, 0.0004427343 }
  0x3c   :  { %143 = vlog2.f32 %v58_v10  ;;  %v63_v41 = vmul.f32 %v136_v8, %v62_v28 }
  0x3d   :  { %145 = vlog2.f32 %v67_v11  ;;  %v72_v43 = vmul.f32 %v138_v9, %v71_v32 }
  0x44   :  { %v140_v12 = vpop.eup %139 }
  0x45   :  { %v142_v13 = vpop.eup %141  ;;  %v86_v15 = vmul.f32 %v140_v12, %v136_v8 }
  0x46   :  { %v87_v17 = vmul.f32 %v142_v13, %v138_v9  ;;  %v144_v30 = vpop.eup %143 }
  0x47   :  { %v88_v18 = vsel %vm84_vm0, %v140_v12, %v86_v15  ;;  %v146_v34 = vpop.eup %145  ;;  %v60_v40 = vmul.f32 0.6931472, %v144_v30 }
  0x48   :  { %v89_v19 = vsel %vm85_vm1, %v142_v13, %v87_v17  ;;  %v90_v20 = vsub.f32 %v88_v18, %v42_v14  ;;  %v69_v42 = vmul.f32 0.6931472, %v146_v34 }
  0x49   :  { %v91_v21 = vsub.f32 %v89_v19, %v43_v16  ;;  %v66_v46 = vsel %vm65_vm2, %v63_v41, %v60_v40 }
  0x4a   :  { %v128_v23 = vadd.f32 -1.0, %v90_v20  ;;  %v75_v47 = vsel %vm74_vm3, %v72_v43, %v69_v42  ;;  %v76_v48 = vadd.f32 %v66_v46, %v56_v44 }
  0x4b   :  { %v129_v25 = vadd.f32 -1.0, %v91_v21  ;;  %v77_v50 = vadd.f32 %v75_v47, %v57_v45 }
  0x4c   :  { %v94_v26 = vmul.f32 19.96008, %v128_v23 }
  0x4d   :  { %v95_v27 = vmul.f32 19.96008, %v129_v25 }
  0x4e   :  { %v96_v29 = vmul.f32 1.442695, %v94_v26 }
  0x4f   :  { %v98_v33 = vmul.f32 1.442695, %v95_v27 }
  0x50   :  { %147 = vpow2.f32 %v96_v29 }
  0x51   :  { %149 = vpow2.f32 %v98_v33 }
  0x5a   :  { %v148_v49 = vpop.eup %147 }
  0x5b   :  { %v150_v51 = vpop.eup %149  ;;  %v100_v52 = vsub.f32 1.0, %v148_v49 }
  0x5c   :  { %v101_v53 = vsub.f32 1.0, %v150_v51 }
  0x5d   :  { %v102_v54 = vmul.f32 %v100_v52, %v76_v48 }
  0x5e   :  { %v103_v55 = vmul.f32 %v101_v53, %v77_v50 }
  0x60   :  { %v104_v56 = vadd.f32 %v103_v55, %v102_v54 }
  0x62   :  { %v105_v57 = vrot.slane %v104_v56, 4 }
  0x64   :  { %v106_v58 = vadd.f32 %v105_v57, %v104_v56 }
  0x66   :  { %v107_v59 = vrot.slane %v106_v58, 2 }
  0x68   :  { %v108_v60 = vadd.f32 %v107_v59, %v106_v58 }
  0x6a   :  { %v109_v61 = vrot.slane %v108_v60, 1 }
  0x6c   :  { %v110_v62 = vadd.f32 %v109_v61, %v108_v60 }
  0x6e   :  { %111 = vst [vmem:[#allocation7] sm:$0x1] %v110_v62 }
  0x6f   :  { %206 = shalt.err (!%p203_p6)
}
  0x70   :  { %s207_s11 = scalar_lea.hbm %s281_s2, 16 }
  0x71   :  { %p208_p7 = scmp.ne.s32.totalorder %s281_s2, %s207_s11  ;;  %p211_p8 = scmp.lt.u32.totalorder %s207_s11, %s281_s2 }
  0x73   :  { %p213_p9 = pnand %p211_p8, %p208_p7 }
  0x75   :  { %216 = shalt.err (!%p213_p9)
}
  0x76   :  { %121 = dma.vmem_to_hbm [thread:$0]  %s119_s6, 16, %s281_s2, [#allocation4]  }
  0x77   :  { %221 = dma.done.wait [#allocation4], 16  }
  0x78   :  { %222 = vsyncadd [#allocation4], 4294967280 }
  0x79   :  { %125 = vsyncpa [#allocation3], 1 }
  0x7a   :  { %126 = vsyncpa [#allocation6], 1 }
  0x7b   :  { %127 = vsyncpa [#allocation4], 1 }

</bundles_post_ra>
